<compile_context>
chip_gen: v7x
topology: tpu7x:2x2x1
jax: 0.10.0
libtpu: 0.0.40
codegen_flags: <defaults>
</compile_context>

<pallas_src>
import functools

import jax
import jax.numpy as jnp
from jax import lax
from jax.experimental import pallas as pl
from jax.experimental.pallas import tpu as pltpu


def _hard_onehot(x):
    """One-hot of argmax along the last (lane) dim; first occurrence on ties."""
    v = x.shape[-1]
    col = lax.broadcasted_iota(jnp.int32, x.shape, dimension=x.ndim - 1)
    m = jnp.max(x, axis=-1, keepdims=True)
    idx = jnp.min(jnp.where(x == m, col, v), axis=-1, keepdims=True)
    return (col == idx).astype(jnp.float32)


def _gs_train_kernel(temp_ref, logits_ref, noise_ref, out_ref, *, straight_through):
    x = logits_ref[...].astype(jnp.float32)
    g = noise_ref[...].astype(jnp.float32)
    y = x + g

    if straight_through:
        # Forward value of the ST estimator is the hard one-hot of the soft sample.
        # argmax(softmax(y / t)) == argmax(y) for t > 0, so skip max-subtract/exp/sum/div.
        out_ref[...] = _hard_onehot(y)
        return

    inv_t = jnp.float32(1.0) / temp_ref[0]          # SMEM scalar read
    y = y * inv_t
    y = y - jnp.max(y, axis=-1, keepdims=True)
    e = jnp.exp(y)
    out_ref[...] = e / jnp.sum(e, axis=-1, keepdims=True)


def _gs_eval_kernel(logits_ref, out_ref):
    # eval mode: deterministic hard one-hot of the logits
    out_ref[...] = _hard_onehot(logits_ref[...].astype(jnp.float32))


def _choose_block_rows(batch, requested):
    block_rows = min(int(requested), int(batch))
    if block_rows != batch and block_rows % 8 != 0:
        block_rows = max(8, (block_rows // 8) * 8)
    return block_rows


def gumbel_softmax_layer(logits, key, *, temperature=1.0, training=True,
                         straight_through=False, block_rows=512):
    """Pallas forward of GumbelSoftmaxLayer.

    logits: [B, V] float array (V ideally a multiple of 128 for lane-dense stores).
    key:    jax.random key used for the Gumbel noise (training mode only).
    """
    B, V = logits.shape
    block_rows = _choose_block_rows(B, block_rows)
    grid = (pl.cdiv(B, block_rows),)
    out_shape = jax.ShapeDtypeStruct((B, V), jnp.float32)
    cparams = pltpu.CompilerParams(dimension_semantics=("parallel",))

    if not training:
        return pl.pallas_call(
            _gs_eval_kernel,
            out_shape=out_shape,
            grid_spec=pltpu.PrefetchScalarGridSpec(
                num_scalar_prefetch=0,
                grid=grid,
                in_specs=[pl.BlockSpec((block_rows, V), lambda i: (i, 0))],
                out_specs=pl.BlockSpec((block_rows, V), lambda i: (i, 0)),
            ),
            compiler_params=cparams,
        )(logits)

    # Gumbel(0,1) noise generated outside the kernel (portable; in-kernel HW PRNG has no
    # CPU/interpret lowering).
    noise = jax.random.gumbel(key, (B, V), dtype=jnp.float32)
    temp = jnp.asarray([temperature], dtype=jnp.float32)

    kernel = functools.partial(_gs_train_kernel,
                               straight_through=bool(straight_through))
    return pl.pallas_call(
        kernel,
        out_shape=out_shape,
        grid_spec=pltpu.PrefetchScalarGridSpec(
            num_scalar_prefetch=1,                      # temperature lands in SMEM
            grid=grid,
            in_specs=[pl.BlockSpec((block_rows, V), lambda i, t: (i, 0)),
                      pl.BlockSpec((block_rows, V), lambda i, t: (i, 0))],
            out_specs=pl.BlockSpec((block_rows, V), lambda i, t: (i, 0)),
        ),
        compiler_params=cparams,
    )(temp, logits, noise)


if __name__ == "__main__":
    key = jax.random.PRNGKey(0)
    k_logits, k_noise = jax.random.split(key)

    B, V = 16, 128
    logits = jax.random.normal(k_logits, (B, V), dtype=jnp.float32)

    # default config: temperature=1.0, straight_through=False, module in training mode
    out = jax.block_until_ready(
        gumbel_softmax_layer(logits, k_noise, temperature=1.0,
                             training=True, straight_through=False))
    assert out.shape == (B, V) and out.dtype == jnp.float32
    assert bool(jnp.all(jnp.isfinite(out)))
    assert bool(jnp.allclose(jnp.sum(out, axis=-1), 1.0, atol=1e-4))
    assert bool(jnp.all(out >= 0.0))

    # straight-through path: hard one-hot rows
    out_st = jax.block_until_ready(
        gumbel_softmax_layer(logits, k_noise, straight_through=True))
    assert bool(jnp.allclose(jnp.sum(out_st, axis=-1), 1.0))
    assert bool(jnp.all(jnp.max(out_st, axis=-1) == 1.0))
    # ST forward must pick the same index as the soft sample's argmax (same noise).
    assert bool(jnp.array_equal(jnp.argmax(out_st, axis=-1), jnp.argmax(out, axis=-1)))

    # eval path: one_hot(argmax(logits)) — exact match vs reference
    out_eval = jax.block_until_ready(
        gumbel_softmax_layer(logits, k_noise, training=False))
    ref_eval = jax.nn.one_hot(jnp.argmax(logits, axis=-1), V, dtype=jnp.float32)
    assert bool(jnp.array_equal(out_eval, ref_eval))

    print("KERNEL_OK")
</pallas_src>

<mosaic_0001>
module attributes {stable_mosaic.version = 11 : i64} {
  func.func @_gs_train_kernel(%arg0: i32, %arg1: memref<1xf32, #tpu.memory_space<smem>>, %arg2: memref<16x128xf32, #tpu.memory_space<vmem>>, %arg3: memref<16x128xf32, #tpu.memory_space<vmem>>, %arg4: memref<16x128xf32, #tpu.memory_space<vmem>>) attributes {dimension_semantics = [#tpu.dimension_semantics<parallel>], iteration_bounds = array<i64: 1>, scalar_prefetch = 1 : i64, scratch_operands = 0 : i64, tpu.core_type = #tpu.core_type<tc>, window_params = [{transform_indices = @transform_0, window_bounds = array<i64: 16, 128>}, {transform_indices = @transform_1, window_bounds = array<i64: 16, 128>}, {transform_indices = @transform_2, window_bounds = array<i64: 16, 128>}]} {
    %c0 = arith.constant 0 : index
    %c0_0 = arith.constant 0 : index
    %0 = vector.load %arg2[%c0, %c0_0] : memref<16x128xf32, #tpu.memory_space<vmem>>, vector<16x128xf32>
    %c0_1 = arith.constant 0 : index
    %c0_2 = arith.constant 0 : index
    %1 = vector.load %arg3[%c0_1, %c0_2] : memref<16x128xf32, #tpu.memory_space<vmem>>, vector<16x128xf32>
    %2 = arith.addf %0, %1 : vector<16x128xf32>
    %c0_3 = arith.constant 0 : index
    %3 = memref.load %arg1[%c0_3] : memref<1xf32, #tpu.memory_space<smem>>
    %cst = arith.constant 1.000000e+00 : f32
    %4 = arith.divf %cst, %3 : f32
    %5 = vector.broadcast %4 : f32 to vector<16x128xf32>
    %6 = arith.mulf %2, %5 : vector<16x128xf32>
    %cst_4 = arith.constant dense<0xFF800000> : vector<16xf32>
    %7 = vector.multi_reduction <maximumf>, %6, %cst_4 [1] : vector<16x128xf32> to vector<16xf32>
    %8 = vector.shape_cast %7 : vector<16xf32> to vector<16x1xf32>
    %9 = vector.broadcast %8 : vector<16x1xf32> to vector<16x128xf32>
    %10 = arith.subf %6, %9 : vector<16x128xf32>
    %11 = math.exp %10 : vector<16x128xf32>
    %cst_5 = arith.constant dense<0.000000e+00> : vector<16xf32>
    %12 = vector.multi_reduction <add>, %11, %cst_5 [1] : vector<16x128xf32> to vector<16xf32>
    %13 = vector.shape_cast %12 : vector<16xf32> to vector<16x1xf32>
    %14 = vector.broadcast %13 : vector<16x1xf32> to vector<16x128xf32>
    %15 = arith.divf %11, %14 : vector<16x128xf32>
    %c0_6 = arith.constant 0 : index
    %c0_7 = arith.constant 0 : index
    %16 = vector.load %arg4[%c0_6, %c0_7] : memref<16x128xf32, #tpu.memory_space<vmem>>, vector<16x128xf32>
    tpu.vector_store %arg4[%c0_6, %c0_7], %15 {strides = array<i32>} : memref<16x128xf32, #tpu.memory_space<vmem>>, vector<16x128xf32>,
    return
  }
  func.func @transform_0(%arg0: i32, %arg1: memref<1xf32, #tpu.memory_space<smem>>) -> (i32, i32) {
    %c0_i32 = arith.constant 0 : i32
    %c0_i32_0 = arith.constant 0 : i32
    return %arg0, %c0_i32 : i32, i32
  }
  func.func @transform_1(%arg0: i32, %arg1: memref<1xf32, #tpu.memory_space<smem>>) -> (i32, i32) {
    %c0_i32 = arith.constant 0 : i32
    %c0_i32_0 = arith.constant 0 : i32
    return %arg0, %c0_i32 : i32, i32
  }
  func.func @transform_2(%arg0: i32, %arg1: memref<1xf32, #tpu.memory_space<smem>>) -> (i32, i32) {
    %c0_i32 = arith.constant 0 : i32
    %c0_i32_0 = arith.constant 0 : i32
    return %arg0, %c0_i32 : i32, i32
  }
}

</mosaic_0001>

<bundles_post_ra>
// kernel: tpu_custom_call.1
= control target key start
LH: loop header
LB: loop body
LE: loop exit
PB: predicated region body
PF: predicated region fallthrough
CT: control target
= control target key end

     0   :  { %9 = vsyncpa [#allocation5], 0  ;;  %s255_s0 = inlined_call_operand.<no memory space> [shape: f32[1], index: 0, kind: input, shape index: {}]   ;;  %s256_s1 = inlined_call_operand.hbm [shape: f32[16,128], index: 1, kind: input, shape index: {}]   ;;  %s257_s2 = inlined_call_operand.hbm [shape: f32[16,128], index: 2, kind: input, shape index: {}]   ;;  %s258_s3 = inlined_call_operand.hbm [shape: f32[16,128], index: 3, kind: output, shape index: {}]  }
   0x1   :  { %10 = vsyncpa [#allocation8], 0 }
   0x2   :  { %11 = vsyncpa [#allocation6], 0  ;;  %s182_s12 = smov [#allocation4]   ;;  %s110_s16 = scalar_lea.hbm %s256_s1, 256 }
   0x3   :  { %s17_s13 = sshll.u32 %s182_s12, 4  ;;  %p111_p0 = scmp.ne.s32.totalorder %s256_s1, %s110_s16  ;;  %s18_s13 = int_to_ptr.vmem [resolvable:$true] %s17_s13 }
   0x4   :  { %p114_p1 = scmp.lt.u32.totalorder %s110_s16, %s256_s1 }
   0x6   :  { %p116_p2 = pnand %p114_p1, %p111_p0 }
   0x8   :  { %119 = shalt.err (!%p116_p2)
}
   0x9   :  { %s120_s21 = scalar_lea.vmem %s18_s13, 256  ;;  %p125_p4 = scmp.lt.s32.totalorder %s18_s13, %s18_s13 }
   0xa   :  { %p121_p3 = scmp.ne.s32.totalorder %s18_s13, %s120_s21  ;;  %p126_p5 = scmp.lt.s32.totalorder %s120_s21, %s120_s21 }
   0xc   :  { %p127_p6 = por %p126_p5, %p125_p4 }
   0xe   :  { %p128_p7 = pnand %p127_p6, %p121_p3 }
  0x10   :  { %131 = shalt.err (!%p128_p7)
}
  0x11   :  { %s183_s22 = smov 128   ;;  %s184_s23 = smov 8  }
  0x12   :  { %23 = dma.hbm_to_vmem [thread:$0]  %s256_s1, 256, %s18_s13, [#allocation5], %s183_s22, %s183_s22, %s184_s23  }
  0x13   :  { %s185_s26 = smov [#allocation7]   ;;  %s132_s30 = scalar_lea.hbm %s257_s2, 256 }
  0x14   :  { %s29_s27 = sshll.u32 %s185_s26, 4  ;;  %p133_p8 = scmp.ne.s32.totalorder %s257_s2, %s132_s30  ;;  %s30_s27 = int_to_ptr.vmem [resolvable:$true] %s29_s27 }
  0x15   :  { %p136_p9 = scmp.lt.u32.totalorder %s132_s30, %s257_s2 }
  0x17   :  { %p138_p10 = pnand %p136_p9, %p133_p8 }
  0x19   :  { %141 = shalt.err (!%p138_p10)
}
  0x1a   :  { %s142_s8 = scalar_lea.vmem %s30_s27, 256  ;;  %p147_p12 = scmp.lt.s32.totalorder %s30_s27, %s30_s27 }
  0x1b   :  { %p143_p11 = scmp.ne.s32.totalorder %s30_s27, %s142_s8  ;;  %p148_p13 = scmp.lt.s32.totalorder %s142_s8, %s142_s8 }
  0x1d   :  { %p149_p0 = por %p148_p13, %p147_p12 }
  0x1f   :  { %p150_p1 = pnand %p149_p0, %p143_p11 }
  0x21   :  { %153 = shalt.err (!%p150_p1)
}
  0x22   :  { %35 = dma.hbm_to_vmem [thread:$0]  %s257_s2, 256, %s30_s27, [#allocation8], %s183_s22, %s183_s22, %s184_s23  }
  0x23   :  { %176 = dma.done.wait [#allocation5], 256  }
  0x24   :  { %177 = vsyncadd [#allocation5], 4294967040  ;;  %v49_v0 = vstv %s255_s0 }
  0x25   :  { %178 = dma.done.wait [#allocation8], 256  }
  0x26   :  { %179 = vsyncadd [#allocation8], 4294967040  ;;  %100 = vrcp.f32 %v49_v0  ;;  %v42_v2 = vld [vmem:[#allocation4] sm:$0xff]  ;;  %v44_v3 = vld [vmem:[#allocation7] sm:$0xff]  ;;  %s186_s0 = smov [#allocation9]  }
  0x27   :  { %v46_v4 = vadd.f32 %v44_v3, %v42_v2  ;;  %v43_v5 = vld [vmem:[#allocation4 + $0x8] sm:$0xff]  ;;  %v45_v6 = vld [vmem:[#allocation7 + $0x8] sm:$0xff]  ;;  %s80_s2 = sshll.u32 %s186_s0, 4  ;;  %s81_s2 = int_to_ptr.vmem [resolvable:$true] %s80_s2 }
  0x28   :  { %v47_v8 = vadd.f32 %v45_v6, %v43_v5  ;;  %s154_s13 = scalar_lea.vmem %s81_s2, 256  ;;  %p159_p3 = scmp.lt.s32.totalorder %s81_s2, %s81_s2 }
  0x29   :  { %p155_p2 = scmp.ne.s32.totalorder %s81_s2, %s154_s13  ;;  %p160_p4 = scmp.lt.s32.totalorder %s154_s13, %s154_s13 }
  0x2b   :  { %p161_p5 = por %p160_p4, %p159_p3 }
  0x2d   :  { %p162_p6 = pnand %p161_p5, %p155_p2 }
  0x30   :  { %v101_v1 = vpop.eup %100 }
  0x31   :  { %93 = vpush %v101_v1 }
  0x62   :  { %s94_s12 = spop %93 }
  0x63   :  { %v52_v7 = vstv %s94_s12 }
  0x64   :  { %v53_v9 = vmul.f32 %v52_v7, %v46_v4  ;;  %v54_v10 = vmul.f32 %v52_v7, %v47_v8 }
  0x66   :  { %55 = vmax.xlane.f32.xlu0 %v53_v9 }
  0x6a   :  { %57 = vmax.xlane.f32.xlu0 %v54_v10 }
  0xf3   :  { %v56_v11 = vpop.xlane.xlu0 %55 }
  0xf4   :  { %v59_v12 = vsub.f32 %v53_v9, %v56_v11 }
  0xf6   :  { %v61_v13 = vmul.f32 1.442695, %v59_v12 }
  0xf7   :  { %v58_v14 = vpop.xlane.xlu0 %57 }
  0xf8   :  { %102 = vpow2.f32 %v61_v13  ;;  %v60_v15 = vsub.f32 %v54_v10, %v58_v14 }
  0xfa   :  { %v63_v16 = vmul.f32 1.442695, %v60_v15 }
  0xfc   :  { %104 = vpow2.f32 %v63_v16 }
 0x102   :  { %v103_v17 = vpop.eup %102 }
 0x103   :  { %65 = vadd.xlane.f32.xlu1 %v103_v17 }
 0x106   :  { %v105_v18 = vpop.eup %104 }
 0x107   :  { %67 = vadd.xlane.f32.xlu1 %v105_v18 }
 0x190   :  { %v66_v19 = vpop.xlane.xlu1 %65 }
 0x191   :  { %106 = vrcp.f32 %v66_v19 }
 0x194   :  { %v68_v20 = vpop.xlane.xlu1 %67 }
 0x195   :  { %108 = vrcp.f32 %v68_v20 }
 0x19b   :  { %v107_v21 = vpop.eup %106 }
 0x19c   :  { %v70_v22 = vmul.f32 %v107_v21, %v103_v17 }
 0x19e   :  { %73 = vst [vmem:[#allocation9] sm:$0xff] %v70_v22 }
 0x19f   :  { %v109_v23 = vpop.eup %108 }
 0x1a0   :  { %v72_v24 = vmul.f32 %v109_v23, %v105_v18 }
 0x1a2   :  { %74 = vst [vmem:[#allocation9 + $0x8] sm:$0xff] %v72_v24 }
 0x1a3   :  { %165 = shalt.err (!%p162_p6)
}
 0x1a4   :  { %s166_s16 = scalar_lea.hbm %s258_s3, 256 }
 0x1a5   :  { %p167_p7 = scmp.ne.s32.totalorder %s258_s3, %s166_s16  ;;  %p170_p8 = scmp.lt.u32.totalorder %s166_s16, %s258_s3 }
 0x1a7   :  { %p172_p9 = pnand %p170_p8, %p167_p7 }
 0x1a9   :  { %175 = shalt.err (!%p172_p9)
}
 0x1aa   :  { %86 = dma.vmem_to_hbm [thread:$0]  %s81_s2, 256, %s258_s3, [#allocation6], %s183_s22, %s183_s22, %s184_s23  }
 0x1ab   :  { %180 = dma.done.wait [#allocation6], 256  }
 0x1ac   :  { %181 = vsyncadd [#allocation6], 4294967040 }
 0x1ad   :  { %90 = vsyncpa [#allocation5], 1 }
 0x1ae   :  { %91 = vsyncpa [#allocation8], 1 }
 0x1af   :  { %92 = vsyncpa [#allocation6], 1 }

</bundles_post_ra>
